<compile_context>
chip_gen: v7x
topology: tpu7x:2x2x1
jax: 0.10.0
libtpu: 0.0.40
codegen_flags: <defaults>
</compile_context>

<pallas_src>
import functools

import jax
import jax.numpy as jnp
from jax.experimental import pallas as pl
from jax.experimental.pallas import tpu as pltpu


# ---------------------------------------------------------------------------
# Kernel
# ---------------------------------------------------------------------------
def _llama_mlp_kernel(x_ref, wgu_ref, wd_ref, o_ref, acc_ref, *, ti):
    # x_ref:   (tm, H)       token tile (constant across k)
    # wgu_ref: (H, 2*ti)     fused [gate | up] weight tile for k-th slice
    # wd_ref:  (ti, H)       down_proj weight row tile for k-th slice
    # o_ref:   (tm, H)       output tile (held across k)
    # acc_ref: (tm, H) f32   accumulator scratch
    k = pl.program_id(1)

    x = x_ref[...]

    # One fused gate/up matmul on the MXU -> (tm, 2*ti), f32 accumulation.
    gu = jnp.dot(x, wgu_ref[...], preferred_element_type=jnp.float32)
    g = gu[:, :ti]
    u = gu[:, ti:]

    # SiLU(g) * u in f32 (sigmoid goes to the EUP; v5e has no bf16 VPU path).
    h = (g * jax.nn.sigmoid(g)) * u

    # Partial down-projection for this intermediate slice.
    partial = jnp.dot(h.astype(wd_ref.dtype), wd_ref[...],
                      preferred_element_type=jnp.float32)

    @pl.when(k == 0)
    def _():
        acc_ref[...] = partial            # direct write: no zero-init + re-read

    @pl.when(k != 0)
    def _():
        acc_ref[...] += partial

    @pl.when(k == pl.num_programs(1) - 1)
    def _():
        o_ref[...] = acc_ref[...].astype(o_ref.dtype)


# ---------------------------------------------------------------------------
# Tile / VMEM planning
# ---------------------------------------------------------------------------
def _round_up(x, m):
    return -(-x // m) * m


def _vmem_capacity_bytes():
    """Physical VMEM per TensorCore; conservative fallback if query fails."""
    try:
        return int(pltpu.get_tpu_info().vmem_capacity_bytes)
    except Exception:
        return 64 * 1024 * 1024       # v7x per-TC size == safest assumption


def _vmem_footprint(tm, ti, H, x_itemsize, w_itemsize):
    """Double-buffered VMEM footprint for one grid step."""
    x_and_out = 2 * 2 * tm * H * x_itemsize         # x tile + out tile, 2 buffers each
    weights = 2 * 3 * ti * H * w_itemsize           # (2*ti fused gate/up + ti down) * 2 buffers
    acc = tm * H * 4                                 # f32 accumulator scratch
    return x_and_out + weights + acc


def _choose_tile(target, total, granule):
    """Largest tile <= target that is a multiple of `granule`.  Prefers an
    exact divisor of `total` within (target/2, target]; otherwise the caller
    pads `total` up to a multiple of the returned tile."""
    target = max(granule, min(target, _round_up(total, granule)))
    target = target // granule * granule
    for t in range(target, target // 2, -granule):
        if total % t == 0:
            return t
    return target


def _plan_tiles(M, I, H, x_dtype, w_dtype):
    x_it = jnp.dtype(x_dtype).itemsize
    w_it = jnp.dtype(w_dtype).itemsize

    # Sublane-packing floor for the token tile: 8 (f32), 16 (bf16), 32 (int8/fp8).
    granule_m = max(8, 32 // x_it)

    capacity = _vmem_capacity_bytes()
    budget = int(capacity * 0.8)                   # headroom for compiler scratch
    two_core = capacity <= 64 * 1024 * 1024        # v7x: 64 MiB/TC, 2 TCs/chip

    # Per-generation targets: big enough to be compute-bound
    # (arithmetic intensity per k step = 2*tm/w_itemsize flops/byte).
    if budget >= 90 * 1024 * 1024:                 # v5e / v6e (128 MiB physical)
        tm_t, ti_t = 1024, 512
    else:                                          # v7x (64 MiB physical)
        tm_t, ti_t = 512, 256

    # v7x: keep >= 2 token tiles so the "parallel" axis shards across both TCs.
    # TODO(synk): for small-M decode on v7x, shard the k axis across the two
    # TensorCores and combine partials in VMEM_SHARED instead of the token axis.
    if two_core and M >= 2 * granule_m:
        half = max(granule_m, (M // 2) // granule_m * granule_m)
        tm_t = min(tm_t, half)

    # Shrink targets until the double-buffered footprint fits the VMEM budget.
    while _vmem_footprint(tm_t, ti_t, H, x_it, w_it) > budget:
        if ti_t > 256:
            ti_t //= 2
        elif tm_t > 256:
            tm_t //= 2
        elif ti_t > 128:
            ti_t //= 2
        elif tm_t > granule_m:
            tm_t //= 2
        else:
            break

    tm = _choose_tile(tm_t, M, granule_m)
    ti = _choose_tile(ti_t, I, 128)
    return tm, ti, budget


# ---------------------------------------------------------------------------
# pallas_call wrapper
# ---------------------------------------------------------------------------
@functools.partial(jax.jit, static_argnames=("tm", "ti", "vmem_limit_bytes"))
def _llama_mlp_call(x, w_gate, w_up, w_down, *, tm, ti, vmem_limit_bytes):
    """x: (M, H).  w_gate/w_up: (H, I).  w_down: (I, H)."""
    M, H = x.shape
    I = w_gate.shape[1]

    Mp = _round_up(M, tm)
    Ip = _round_up(I, ti)

    # Zero-pad the token axis and (if needed) the intermediate axis.  Padded
    # intermediate features contribute silu(0) * 0 = 0, so the result is exact.
    if Mp != M:
        x = jnp.pad(x, ((0, Mp - M), (0, 0)))
    if Ip != I:
        w_gate = jnp.pad(w_gate, ((0, 0), (0, Ip - I)))
        w_up = jnp.pad(w_up, ((0, 0), (0, Ip - I)))
        w_down = jnp.pad(w_down, ((0, Ip - I), (0, 0)))

    nk = Ip // ti

    # Pre-block gate/up into one fused, k-tile-contiguous weight:
    #   w_gu[k, :, :ti] = gate columns of tile k, w_gu[k, :, ti:] = up columns.
    # Each (H, 2*ti) tile is contiguous in HBM -> one clean DMA stream per step.
    # (For a real model, do this packing once at weight-load time, not per call.)
    wg_b = w_gate.reshape(H, nk, ti).transpose(1, 0, 2)      # (nk, H, ti)
    wu_b = w_up.reshape(H, nk, ti).transpose(1, 0, 2)        # (nk, H, ti)
    w_gu = jnp.concatenate([wg_b, wu_b], axis=-1)            # (nk, H, 2*ti)

    grid = (Mp // tm, nk)

    x_it = jnp.dtype(x.dtype).itemsize
    w_it = jnp.dtype(w_gate.dtype).itemsize
    cost = pl.CostEstimate(
        flops=6 * Mp * H * Ip,                    # three (2*M*H*I)-flop matmuls
        transcendentals=Mp * Ip,                  # sigmoid in SiLU
        bytes_accessed=(2 * Mp * H * x_it                        # x in + out
                        + (Mp // tm) * 3 * H * Ip * w_it),       # weights re-streamed per token tile
    )

    kernel = functools.partial(_llama_mlp_kernel, ti=ti)

    out = pl.pallas_call(
        kernel,
        out_shape=jax.ShapeDtypeStruct((Mp, H), x.dtype),
        grid_spec=pltpu.PrefetchScalarGridSpec(
            num_scalar_prefetch=0,
            grid=grid,
            in_specs=[
                pl.BlockSpec((tm, H), lambda i, k: (i, 0)),                # x token tile
                pl.BlockSpec((None, H, 2 * ti), lambda i, k: (k, 0, 0)),   # fused gate/up tile
                pl.BlockSpec((ti, H), lambda i, k: (k, 0)),                # down_proj row tile
            ],
            out_specs=pl.BlockSpec((tm, H), lambda i, k: (i, 0)),
            scratch_shapes=[pltpu.VMEM((tm, H), jnp.float32)],
        ),
        compiler_params=pltpu.CompilerParams(
            dimension_semantics=("parallel", "arbitrary"),
            vmem_limit_bytes=vmem_limit_bytes,
        ),
        cost_estimate=cost,
    )(x, w_gu, w_down)

    return out[:M] if Mp != M else out


def llama_mlp(x, w_gate, w_up, w_down, *, tm=None, ti=None):
    """LlamaMLP forward.  x: (..., H).  Weights stored (in, out):
    w_gate/w_up: (H, I), w_down: (I, H)  (== nn.Linear weight transposed)."""
    *lead, H = x.shape
    I = w_gate.shape[1]
    assert w_gate.shape == (H, I)
    assert w_up.shape == (H, I)
    assert w_down.shape == (I, H)

    x2d = x.reshape(-1, H)
    M = x2d.shape[0]

    auto_tm, auto_ti, budget = _plan_tiles(M, I, H, x2d.dtype, w_gate.dtype)
    tm = auto_tm if tm is None else tm
    ti = auto_ti if ti is None else ti

    out = _llama_mlp_call(x2d, w_gate, w_up, w_down,
                          tm=tm, ti=ti, vmem_limit_bytes=budget)
    return out.reshape(*lead, H)


# ---------------------------------------------------------------------------
# Reference & demo
# ---------------------------------------------------------------------------
def llama_mlp_ref(x, w_gate, w_up, w_down):
    g = x @ w_gate
    u = x @ w_up
    return (jax.nn.silu(g) * u) @ w_down


if __name__ == "__main__":
    # Small config consistent with the module: hidden_size=32, intermediate=64.
    batch, seq, hidden, intermediate = 2, 8, 32, 64

    key = jax.random.PRNGKey(0)
    kx, kg, ku, kd = jax.random.split(key, 4)

    x = jax.random.normal(kx, (batch, seq, hidden), dtype=jnp.float32)
    # Deterministic synthetic weights, stored as (in, out).
    w_gate = jax.random.normal(kg, (hidden, intermediate), dtype=jnp.float32) * 0.05
    w_up   = jax.random.normal(ku, (hidden, intermediate), dtype=jnp.float32) * 0.05
    w_down = jax.random.normal(kd, (intermediate, hidden), dtype=jnp.float32) * 0.05

    ref = llama_mlp_ref(x.reshape(-1, hidden), w_gate, w_up, w_down)
    ref = ref.reshape(batch, seq, hidden)

    # f32 path (tight tolerance vs pure-JAX reference).
    out = llama_mlp(x, w_gate, w_up, w_down)
    jax.block_until_ready(out)
    assert out.shape == (batch, seq, hidden)
    assert jnp.allclose(out, ref, atol=1e-5, rtol=1e-5), "f32 mismatch vs reference"

    # bf16 path (what real Llama sizes should use on v5e/v6e/v7x: halves HBM
    # weight traffic, doubles MXU rate); f32 accumulation inside the kernel.
    out_bf16 = llama_mlp(x.astype(jnp.bfloat16),
                         w_gate.astype(jnp.bfloat16),
                         w_up.astype(jnp.bfloat16),
                         w_down.astype(jnp.bfloat16))
    jax.block_until_ready(out_bf16)
    assert jnp.allclose(out_bf16.astype(jnp.float32), ref, atol=5e-2, rtol=5e-2), \
        "bf16 mismatch vs reference"

    print("KERNEL_OK")
</pallas_src>

<mosaic_0001>
module attributes {stable_mosaic.version = 11 : i64} {
  func.func @_llama_mlp_kernel(%arg0: i32, %arg1: i32, %arg2: memref<8x32xf32, #tpu.memory_space<vmem>>, %arg3: memref<1x32x256xf32, #tpu.memory_space<vmem>>, %arg4: memref<128x32xf32, #tpu.memory_space<vmem>>, %arg5: memref<8x32xf32, #tpu.memory_space<vmem>>, %arg6: memref<8x32xf32, #tpu.memory_space<vmem>>) attributes {dimension_semantics = [#tpu.dimension_semantics<parallel>, #tpu.dimension_semantics<arbitrary>], iteration_bounds = array<i64: 2, 1>, scalar_prefetch = 0 : i64, scratch_operands = 1 : i64, tpu.core_type = #tpu.core_type<tc>, window_params = [{transform_indices = @transform_0, window_bounds = array<i64: 8, 32>}, {transform_indices = @transform_1, window_bounds = array<i64: 1, 32, 256>}, {transform_indices = @transform_2, window_bounds = array<i64: 128, 32>}, {transform_indices = @transform_3, window_bounds = array<i64: 8, 32>}]} {
    %c0 = arith.constant 0 : index
    %c0_0 = arith.constant 0 : index
    %0 = vector.load %arg2[%c0, %c0_0] : memref<8x32xf32, #tpu.memory_space<vmem>>, vector<8x32xf32>
    %c0_1 = arith.constant 0 : index
    %c0_2 = arith.constant 0 : index
    %c0_3 = arith.constant 0 : index
    %1 = vector.load %arg3[%c0_1, %c0_2, %c0_3] : memref<1x32x256xf32, #tpu.memory_space<vmem>>, vector<1x32x256xf32>
    %2 = vector.shape_cast %1 : vector<1x32x256xf32> to vector<32x256xf32>
    %cst = arith.constant dense<0.000000e+00> : vector<8x256xf32>
    %3 = tpu.matmul %0, %2, %cst {dimension_numbers = #tpu.dot_dimension_numbers<[1], [0], [0], [1], [0, 0, 1, 1], [], []>} : vector<8x32xf32>, vector<32x256xf32>, vector<8x256xf32> -> vector<8x256xf32>
    %4 = vector.extract_strided_slice %3 {offsets = [0, 0], sizes = [8, 128], strides = [1, 1]} : vector<8x256xf32> to vector<8x128xf32>
    %5 = vector.extract_strided_slice %3 {offsets = [0, 128], sizes = [8, 128], strides = [1, 1]} : vector<8x256xf32> to vector<8x128xf32>
    %6 = arith.negf %4 : vector<8x128xf32>
    %7 = math.exp %6 : vector<8x128xf32>
    %cst_4 = arith.constant 1.000000e+00 : f32
    %8 = vector.broadcast %cst_4 : f32 to vector<8x128xf32>
    %9 = arith.addf %8, %7 : vector<8x128xf32>
    %10 = arith.divf %8, %9 : vector<8x128xf32>
    %11 = arith.mulf %4, %10 : vector<8x128xf32>
    %12 = arith.mulf %11, %5 : vector<8x128xf32>
    %c0_5 = arith.constant 0 : index
    %c0_6 = arith.constant 0 : index
    %13 = vector.load %arg4[%c0_5, %c0_6] : memref<128x32xf32, #tpu.memory_space<vmem>>, vector<128x32xf32>
    %cst_7 = arith.constant dense<0.000000e+00> : vector<8x32xf32>
    %14 = tpu.matmul %12, %13, %cst_7 {dimension_numbers = #tpu.dot_dimension_numbers<[1], [0], [0], [1], [0, 0, 1, 1], [], []>} : vector<8x128xf32>, vector<128x32xf32>, vector<8x32xf32> -> vector<8x32xf32>
    %c0_i32 = arith.constant 0 : i32
    %15 = arith.cmpi eq, %arg1, %c0_i32 : i32
    %16 = arith.extui %15 : i1 to i32
    %c0_i32_8 = arith.constant 0 : i32
    %17 = arith.cmpi ne, %16, %c0_i32_8 : i32
    scf.if %17 {
      %c0_13 = arith.constant 0 : index
      %c0_14 = arith.constant 0 : index
      %24 = vector.load %arg6[%c0_13, %c0_14] : memref<8x32xf32, #tpu.memory_space<vmem>>, vector<8x32xf32>
      tpu.vector_store %arg6[%c0_13, %c0_14], %14 {strides = array<i32>} : memref<8x32xf32, #tpu.memory_space<vmem>>, vector<8x32xf32>,
    } else {
    }
    %c0_i32_9 = arith.constant 0 : i32
    %18 = arith.cmpi ne, %arg1, %c0_i32_9 : i32
    %19 = arith.extui %18 : i1 to i32
    %c0_i32_10 = arith.constant 0 : i32
    %20 = arith.cmpi ne, %19, %c0_i32_10 : i32
    scf.if %20 {
      %c0_13 = arith.constant 0 : index
      %c0_14 = arith.constant 0 : index
      %24 = vector.load %arg6[%c0_13, %c0_14] : memref<8x32xf32, #tpu.memory_space<vmem>>, vector<8x32xf32>
      %25 = arith.addf %24, %14 : vector<8x32xf32>
      %c0_15 = arith.constant 0 : index
      %c0_16 = arith.constant 0 : index
      %26 = vector.load %arg6[%c0_15, %c0_16] : memref<8x32xf32, #tpu.memory_space<vmem>>, vector<8x32xf32>
      tpu.vector_store %arg6[%c0_15, %c0_16], %25 {strides = array<i32>} : memref<8x32xf32, #tpu.memory_space<vmem>>, vector<8x32xf32>,
    } else {
    }
    %c0_i32_11 = arith.constant 0 : i32
    %21 = arith.cmpi eq, %arg1, %c0_i32_11 : i32
    %22 = arith.extui %21 : i1 to i32
    %c0_i32_12 = arith.constant 0 : i32
    %23 = arith.cmpi ne, %22, %c0_i32_12 : i32
    scf.if %23 {
      %c0_13 = arith.constant 0 : index
      %c0_14 = arith.constant 0 : index
      %24 = vector.load %arg6[%c0_13, %c0_14] : memref<8x32xf32, #tpu.memory_space<vmem>>, vector<8x32xf32>
      %c0_15 = arith.constant 0 : index
      %c0_16 = arith.constant 0 : index
      %25 = vector.load %arg5[%c0_15, %c0_16] : memref<8x32xf32, #tpu.memory_space<vmem>>, vector<8x32xf32>
      tpu.vector_store %arg5[%c0_15, %c0_16], %24 {strides = array<i32>} : memref<8x32xf32, #tpu.memory_space<vmem>>, vector<8x32xf32>,
    } else {
    }
    return
  }
  func.func @transform_0(%arg0: i32, %arg1: i32) -> (i32, i32) {
    %c0_i32 = arith.constant 0 : i32
    %c0_i32_0 = arith.constant 0 : i32
    return %arg0, %c0_i32 : i32, i32
  }
  func.func @transform_1(%arg0: i32, %arg1: i32) -> (i32, i32, i32) {
    %c0_i32 = arith.constant 0 : i32
    %c0_i32_0 = arith.constant 0 : i32
    %c0_i32_1 = arith.constant 0 : i32
    return %arg1, %c0_i32, %c0_i32_0 : i32, i32, i32
  }
  func.func @transform_2(%arg0: i32, %arg1: i32) -> (i32, i32) {
    %c0_i32 = arith.constant 0 : i32
    %c0_i32_0 = arith.constant 0 : i32
    return %arg1, %c0_i32 : i32, i32
  }
  func.func @transform_3(%arg0: i32, %arg1: i32) -> (i32, i32) {
    %c0_i32 = arith.constant 0 : i32
    %c0_i32_0 = arith.constant 0 : i32
    return %arg0, %c0_i32 : i32, i32
  }
}

</mosaic_0001>

<bundles_post_ra>
// kernel: _llama_mlp_call.1
= control target key start
LH: loop header
LB: loop body
LE: loop exit
PB: predicated region body
PF: predicated region fallthrough
CT: control target
= control target key end

     0   :  { %8 = vsyncpa [#allocation4], 0  ;;  %s978_s0 = inlined_call_operand.vmem [shape: f32[16,32], index: 0, kind: input, shape index: {}]   ;;  %s979_s1 = inlined_call_operand.vmem [shape: f32[1,32,256], index: 1, kind: input, shape index: {}]   ;;  %s980_s2 = inlined_call_operand.vmem [shape: f32[128,32], index: 2, kind: input, shape index: {}]   ;;  %s981_s3 = inlined_call_operand.hbm [shape: f32[16,32], index: 3, kind: output, shape index: {}]  }
   0x1   :  { %10 = vsyncpa [#allocation4 + $0x1], 0  ;;  %s791_s12 = smov 0   ;;  %s793_s13 = smov 0  }
   0x2   :  { %s795_s14 = smov 0   ;;  %s797_s15 = smov 0  }
   0x3   :  { %s799_s16 = smov 0   ;;  %s801_s17 = smov 0  }
   0x4 LB: > { %s526_s18 = sadd.s32 4294967295, %s765_s17   ;;  %s527_s19 = sadd.s32 4294967294, %s765_s17   ;;  %s765_s17 = sphi %s801_s17, %s16_s17   ;;  %s761_s16 = sphi %s799_s16, %s988_s16   ;;  %s757_s15 = sphi %s797_s15, %s987_s15   ;;  %s753_s14 = sphi %s795_s14, %s986_s14   ;;  %s749_s13 = sphi %s793_s13, %s985_s13   ;;  %s745_s12 = sphi %s791_s12, %s984_s12  }
   0x5   : > { %s28_s20 = sadd.s32 1, %s761_s16  ;;  %s113_s21 = sadd.s32 1, %s753_s14 }
   0x6   : > { %p30_p0 = scmp.ge.s32.totalorder %s28_s20, 2  ;;  %p123_p1 = scmp.ne.s32.totalorder %s753_s14, %s749_s13 }
   0x7   : > { %p124_p2 = scmp.eq.s32.totalorder %s526_s18, 1  ;;  %p129_p3 = scmp.ne.s32.totalorder %s749_s13, %s745_s12 }
   0x8   : > { %s990_s20 = smov (%p30_p0, %s28_s20), 0  ;;  %p130_p5 = scmp.eq.s32.totalorder %s527_s19, 1 }
   0x9   : > { %p831_p4 = por %p124_p2, %p123_p1  ;;  %s110_s23 = ssub.s32 %s761_s16, %s990_s20 }
   0xa   : > { %p532_p6 = scmp.ge.s32.totalorder %s765_s17, 1  ;;  %p111_p7 = scmp.eq.s32.totalorder %s110_s23, 0 }
   0xb   : > { %p838_p8 = por %p130_p5, %p129_p3  ;;  %p172_p9 = scmp.lt.s32.totalorder %s765_s17, 3 }
   0xc   : > { %s844_s25 = scalar_select %p111_p7, %s753_s14, %s113_s21  }
   0xd   : > { %p173_p10 = pnand %p532_p6, %p172_p9 }
   0xe   : > { %v222_v0 = vld [vmem:[%s979_s1 + $0x8] sm:$0xff] (!%p173_p10)  ;;  %v224_v1 = vld [vmem:[%s979_s1 + $0x18] sm:$0xff] (!%p173_p10)  ;;  %v221_v2 = vld [vmem:[%s979_s1] sm:$0xff] (!%p173_p10)  ;;  %p205_p11 = scmp.lt.s32.totalorder (!%p173_p10), %s757_s15, 1  ;;  %v767_v7 = vmov (!%p173_p10), 0.0   ;;  %v768_v12 = vmov (!%p173_p10), 0.0|0.0  }
   0xf   : > { %176 = sbr.rel (%p173_p10) target bundleno = 503 (0x1f7), region = 32  ;;  %v593_v3 = vpack.c.bf16 (!%p173_p10), %v224_v1, %v222_v0  ;;  %v223_v4 = vld [vmem:[%s979_s1 + $0x10] sm:$0xff] (!%p173_p10)  ;;  %v226_v5 = vld [vmem:[%s979_s1 + $0x28] sm:$0xff] (!%p173_p10)  ;;  %v228_v6 = vld [vmem:[%s979_s1 + $0x38] sm:$0xff] (!%p173_p10)  ;;  %297 = vmatprep.mubr.f32.mxu0 (!%p173_p10), %v767_v7  ;;  %601 = vmatprep.subr.bf16.mxu1 (!%p173_p10), %v768_v12  ;;  %vm229_vm0 = vcmask (!%p173_p10), 261120   ;;  %vm769_vm1 = vmmov (!%p173_p10), 0  }
  0x10   : > { %v595_v8 = vpack.c.bf16 (!%p173_p10), %v223_v4, %v221_v2  ;;  %v597_v9 = vpack.c.bf16 (!%p173_p10), %v228_v6, %v226_v5  ;;  %v225_v10 = vld [vmem:[%s979_s1 + $0x20] sm:$0xff] (!%p173_p10)  ;;  %v227_v11 = vld [vmem:[%s979_s1 + $0x30] sm:$0xff] (!%p173_p10)  ;;  %v313_v16 = vld [vmem:[%s980_s2 + $0x8] sm:$0xff] (!%p173_p10)  ;;  %590 = vmatprep.mubr.msk.f32.mxu1 (!%p173_p10), %vm769_vm1, %v767_v7  ;;  %s202_s28 = sand.u32 (!%p173_p10), 1, %s749_s13   ;;  %s538_s30 = sshll.u32 (!%p173_p10), %s757_s15, 7 }
  0x11   : > { %594 = vmatprep.subr.bf16.mxu0 (!%p173_p10), %v593_v3  ;;  %v599_v13 = vpack.c.bf16 (!%p173_p10), %v227_v11, %v225_v10  ;;  %v312_v15 = vld [vmem:[%s980_s2] sm:$0xff] (!%p173_p10)  ;;  %v314_v18 = vld [vmem:[%s980_s2 + $0x10] sm:$0xff] (!%p173_p10)  ;;  %v315_v19 = vld [vmem:[%s980_s2 + $0x18] sm:$0xff] (!%p173_p10)  ;;  %s930_s8 = scalar_lea.hbm (!%p173_p10), %s981_s3, %s538_s30  ;;  %s416_s9 = scalar_lea.sflag (!%p173_p10), [#allocation4], %s202_s28 }
  0x12   : > { %596 = vmatpush1.bf16.msra.mxu0 (!%p173_p10), %v595_v8  ;;  %v602_v17 = vpack.c.bf16 (!%p173_p10), %v313_v16, %v312_v15  ;;  %v605_v20 = vpack.c.bf16 (!%p173_p10), %v315_v19, %v314_v18  ;;  %v316_v21 = vld [vmem:[%s980_s2 + $0x20] sm:$0xff] (!%p173_p10)  ;;  %v317_v22 = vld [vmem:[%s980_s2 + $0x28] sm:$0xff] (!%p173_p10)  ;;  %v318_v24 = vld [vmem:[%s980_s2 + $0x30] sm:$0xff] (!%p173_p10) }
  0x13   : > { %598 = vmatprep.subr.bf16.mxu0 (!%p173_p10), %v597_v9  ;;  %v608_v23 = vpack.c.bf16 (!%p173_p10), %v317_v22, %v316_v21  ;;  %v319_v25 = vld [vmem:[%s980_s2 + $0x38] sm:$0xff] (!%p173_p10)  ;;  %v320_v27 = vld [vmem:[%s980_s2 + $0x40] sm:$0xff] (!%p173_p10)  ;;  %v321_v28 = vld [vmem:[%s980_s2 + $0x48] sm:$0xff] (!%p173_p10) }
  0x14   : > { %603 = vmatpush3.bf16.msra.mxu1 (!%p173_p10), %v602_v17  ;;  %v611_v26 = vpack.c.bf16 (!%p173_p10), %v319_v25, %v318_v24  ;;  %v614_v29 = vpack.c.bf16 (!%p173_p10), %v321_v28, %v320_v27  ;;  %v322_v30 = vld [vmem:[%s980_s2 + $0x50] sm:$0xff] (!%p173_p10)  ;;  %v323_v31 = vld [vmem:[%s980_s2 + $0x58] sm:$0xff] (!%p173_p10)  ;;  %v324_v33 = vld [vmem:[%s980_s2 + $0x60] sm:$0xff] (!%p173_p10) }
  0x15   : > { %604 = vmatprep.subr.bf16.mxu1 (!%p173_p10), %v768_v12  ;;  %v617_v32 = vpack.c.bf16 (!%p173_p10), %v323_v31, %v322_v30  ;;  %v325_v34 = vld [vmem:[%s980_s2 + $0x68] sm:$0xff] (!%p173_p10)  ;;  %v326_v36 = vld [vmem:[%s980_s2 + $0x70] sm:$0xff] (!%p173_p10)  ;;  %v327_v37 = vld [vmem:[%s980_s2 + $0x78] sm:$0xff] (!%p173_p10) }
  0x16   : > { %s206_s23 = scalar_select %p205_p11, %s757_s15, 1  ;;  %600 = vmatpush1.bf16.msra.mxu0 %v599_v13  ;;  %v620_v35 = vpack.c.bf16 %v325_v34, %v324_v33  ;;  %v623_v38 = vpack.c.bf16 %v327_v37, %v326_v36 }
  0x17   : > { %s770_s15 = smov [#allocation3]  }
  0x18   : > { %s534_s26 = sshll.u32 %s206_s23, 3  ;;  %606 = vmatpush3.bf16.msra.mxu1 %v605_v20  ;;  %s691_s11 = sshll.u32 %s770_s15, 4  ;;  %s692_s11 = int_to_ptr.vmem [resolvable:$false] %s691_s11 }
  0x19   : > { %s208_s29 = scalar_lea.vmem %s978_s0, %s534_s26  ;;  %607 = vmatprep.subr.bf16.mxu1 %v768_v12  ;;  %s693_s18 = scalar_lea.vmem %s692_s11, 256 }
  0x1a   : > { %v220_v14 = vld [vmem:[%s208_s29] sm:$0xff]  ;;  %s533_s29 = sshll.u32 %s202_s28, 3 }
  0x1b   : > { %535 = vmatmul.mubr.msk.f32.vlgmr.msra.gmra.mrb[0].mxu0 %vm229_vm0, %v220_v14  ;;  %s204_s4 = scalar_lea.vmem [#allocation3], %s533_s29 }
  0x1c   : > { %609 = vmatpush3.bf16.msra.mxu1 %v608_v23  ;;  %s429_s5 = sshll.u32 %s204_s4, 4  ;;  %s932_s5 = int_to_ptr.vmem [resolvable:$true] %s429_s5 }
  0x1d   : > { %610 = vmatprep.subr.bf16.mxu1 %v768_v12  ;;  %s687_s10 = scalar_lea.vmem %s932_s5, 128  ;;  %p694_p1 = scmp.lt.s32.totalorder %s932_s5, %s692_s11 }
  0x1e   : > { %p688_p12 = scmp.ne.s32.totalorder %s932_s5, %s687_s10  ;;  %p695_p2 = scmp.lt.s32.totalorder %s693_s18, %s687_s10 }
  0x20   : > { %612 = vmatpush3.bf16.msra.mxu1 %v611_v26  ;;  %p689_p13 = pnand %p688_p12, %p831_p4  ;;  %p696_p3 = por %p695_p2, %p694_p1 }
  0x21   : > { %613 = vmatprep.subr.bf16.mxu1 %v768_v12 }
  0x22   : > { %p690_p0 = pneg %p689_p13 }
  0x24   : > { %615 = vmatpush3.bf16.msra.mxu1 %v614_v29  ;;  %p697_p5 = pnand %p696_p3, %p690_p0 }
  0x25   : > { %616 = vmatprep.subr.bf16.mxu1 %v768_v12 }
  0x28   : > { %618 = vmatpush3.bf16.msra.mxu1 %v617_v32 }
  0x29   : > { %619 = vmatprep.subr.bf16.mxu1 %v768_v12 }
  0x2c   : > { %621 = vmatpush3.bf16.msra.mxu1 %v620_v35 }
  0x2d   : > { %622 = vmatprep.subr.bf16.mxu1 %v768_v12 }
  0x30   : > { %624 = vmatpush3.bf16.msra.mxu1 %v623_v38 }
  0xee   : > { %v299_v39 = vpop.f32.mrb[0].mxu0 }
  0xef   : > { %v536_v40 = vmul.f32 -1.442695, %v299_v39  ;;  %v301_v41 = vpop.f32.mrb[1].mxu0 }
  0xf1   : > { %683 = vpow2.f32 %v536_v40 }
  0xfb   : > { %v684_v42 = vpop.eup %683 }
  0xfc   : > { %v307_v43 = vadd.f32 1.0, %v684_v42 }
  0xfe   : > { %685 = vrcp.f32 %v307_v43 }
 0x108   : > { %v686_v44 = vpop.eup %685 }
 0x109   : > { %v310_v45 = vmul.f32 %v686_v44, %v299_v39 }
 0x10b   : > { %v311_v46 = vmul.f32 %v310_v45, %v301_v41 }
 0x10d   : > { %591 = vmatmul.mubr.f32.vlgmr.msra.gmra.mrb[0].mxu1 %v311_v46 }
 0x1e0   : > { %v394_v47 = vpop.f32.mrb[0].mxu1 }
 0x1e1   : > { %402 = vst.msk [vmem:[#allocation2] sm:$0xff] %vm229_vm0, %v394_v47  ;;  %v592_v48 = vpop.f32.mrb[1].mxu1 }
 0x1e8   : > { %v413_v49 = vld [vmem:[#allocation2] sm:$0xff] }
 0x1e9   : > { %414 = vst.msk [vmem:[%s204_s4] sm:$0xff] %vm229_vm0, %v413_v49 }
 0x1ea   : > { %700 = shalt.err (!%p697_p5)
}
 0x1eb   : > { %s701_s19 = scalar_lea.hbm %s930_s8, 128  ;;  %s705_s26 = scalar_lea.hbm %s981_s3, 256 }
 0x1ec   : > { %p702_p6 = scmp.ne.s32.totalorder %s930_s8, %s701_s19  ;;  %p706_p10 = scmp.lt.u32.totalorder %s930_s8, %s981_s3 }
 0x1ed   : > { %p707_p11 = scmp.lt.u32.totalorder %s705_s26, %s701_s19  ;;  %p709_p13 = scmp.lt.u32.totalorder %s701_s19, %s930_s8 }
 0x1ee   : > { %p703_p7 = pnand %p702_p6, %p831_p4 }
 0x1ef   : > { %p708_p12 = por %p707_p11, %p706_p10 }
 0x1f0   : > { %p704_p9 = pneg %p703_p7 }
 0x1f1   : > { %p710_p0 = por %p709_p13, %p708_p12 }
 0x1f3   : > { %p711_p1 = pnand %p710_p0, %p704_p9 }
 0x1f5   : > { %714 = shalt.err (!%p711_p1)
}
 0x1f6   : > { %625 = dma.vmem_to_hbm [thread:$0]  (%p831_p4), %s932_s5, 128, %s930_s8, %s416_s9  }
 0x1f7 PF: > { %p631_p2 = scmp.ge.s32.totalorder %s765_s17, 2  ;;  %s441_s29 = sand.u32 1, %s745_s12  }
 0x1f8   : > { %s442_s30 = scalar_lea.sflag [#allocation4], %s441_s29 }
 0x1f9   : > { %p628_p3 = pnand %p631_p2, %p838_p8 }
 0x1fb   : > { %740 = dma.done.wait (!%p628_p3), %s442_s30, 128  }
 0x1fc   : > { %742 = vsyncadd (!%p628_p3), %s442_s30, 4294967168  ;;  %s16_s17 = sadd.s32 1, %s765_s17   ;;  %s984_s12 = smov %s749_s13 }
 0x1fd   : > { %p13_p5 = scmp.ge.s32.totalorder %s16_s17, 4   ;;  %s985_s13 = smov %s753_s14 }
 0x1fe   : > { %s986_s14 = smov %s844_s25  ;;  %s987_s15 = smov %s761_s16 }
 0x1ff   : > { %s988_s16 = smov %s990_s20  ;;  %15 = sbr.rel (!%p13_p5) target bundleno = 4 (0x4), region = 85 }
 0x206   :  { %447 = vsyncpa [#allocation4], 1 }
 0x207   :  { %449 = vsyncpa [#allocation4 + $0x1], 1 }

</bundles_post_ra>
